<compile_context>
chip_gen: v5e
topology: v5e:2x2
jax: 0.10.0
libtpu: 0.0.40
codegen_flags: <defaults>
</compile_context>

<pallas_src>
import functools

import jax
import jax.numpy as jnp
from jax.experimental import pallas as pl
from jax.experimental.pallas import tpu as pltpu


def rbm_gibbs_kernel(v_ref, wt_ref, w_ref, vb_ref, hb_ref, uh_ref, uv_ref,
                     vout_ref, *, k):
    # Weights in bf16 (native MXU dtype); biases / probabilities stay f32.
    wt = wt_ref[...]            # (n_vis, n_hin) bf16  == W.T
    w = w_ref[...]              # (n_hin, n_vis) bf16  == W
    vb = vb_ref[...]            # (1, n_vis) f32
    hb = hb_ref[...]            # (1, n_hin) f32

    def v_to_h(v_bf16, u):
        # v @ W.T + h_bias -> MXU (bf16 operands, f32 accumulation)
        logits = jnp.dot(v_bf16, wt, preferred_element_type=jnp.float32) + hb
        p_h = jax.nn.sigmoid(logits)
        # torch: relu(sign(p - U)) == 1.0 where p > U else 0.0 ; samples are exact in bf16.
        return jnp.where(p_h > u, 1.0, 0.0).astype(jnp.bfloat16)

    def h_to_v(h_bf16, u):
        # h @ W + v_bias -> MXU
        logits = jnp.dot(h_bf16, w, preferred_element_type=jnp.float32) + vb
        p_v = jax.nn.sigmoid(logits)
        return jnp.where(p_v > u, 1.0, 0.0).astype(jnp.bfloat16)

    # NOTE: casting the input visibles to bf16 is exact for binary {0,1} inputs;
    # for probability-valued inputs it rounds to ~3 decimal digits (acc stays f32).
    h_ = v_to_h(v_ref[...].astype(jnp.bfloat16), uh_ref[0])
    v_ = None
    # k is small and static -> fully unroll the Gibbs chain.
    # TODO(synk): switch to lax.fori_loop (dynamic uh_ref[i]/uv_ref[i] indexing) for k > ~8.
    for i in range(k):
        v_ = h_to_v(h_, uv_ref[i])
        h_ = v_to_h(v_, uh_ref[i + 1])

    vout_ref[...] = v_.astype(vout_ref.dtype)


def _vmem_budget_bytes(tb, n_vis, n_hin, k):
    # Rough budget: bf16 W + W.T, double-buffered f32 v/out tiles, double-buffered
    # noise tiles, plus headroom for f32 logits/probs intermediates.
    w_bytes = 2 * 2 * n_vis * n_hin * 2
    io_bytes = 2 * 2 * tb * n_vis * 4
    noise_bytes = 2 * ((k + 1) * tb * n_hin + k * tb * n_vis) * 4
    interm_bytes = 6 * tb * max(n_vis, n_hin) * 4
    total = w_bytes + io_bytes + noise_bytes + interm_bytes + (2 << 20)
    # Keep under v7x's 64 MiB physical VMEM.
    return min(total, 60 * 1024 * 1024)


def rbm_forward(v, W, v_bias, h_bias, key, k=5, batch_tile=256):
    """Returns (v, v_k) like RBM.forward."""
    assert k >= 1
    B, n_vis = v.shape
    n_hin = W.shape[0]

    # Batch tiling: single full-batch tile when small; 256-row tiles otherwise
    # (multiple of 128 so it also fills the v5e MXU M dimension).
    if B <= batch_tile:
        tb, b_pad = B, B
    else:
        tb = batch_tile
        b_pad = -(-B // tb) * tb

    v_f32 = v.astype(jnp.float32)
    if b_pad != B:
        v_f32 = jnp.pad(v_f32, ((0, b_pad - B), (0, 0)))

    # bf16 weights; W.T precomputed once so every matmul is canonical [M,K]x[K,N].
    w_bf = W.astype(jnp.bfloat16)                 # (n_hin, n_vis)
    wt_bf = W.T.astype(jnp.bfloat16)              # (n_vis, n_hin)
    vb2 = v_bias.reshape(1, n_vis).astype(jnp.float32)
    hb2 = h_bias.reshape(1, n_hin).astype(jnp.float32)

    # Host-side uniform noise in [0,1): one independent draw per Bernoulli sample.
    k_h, k_v = jax.random.split(key)
    u_h = jax.random.uniform(k_h, (k + 1, b_pad, n_hin), dtype=jnp.float32)
    u_v = jax.random.uniform(k_v, (k, b_pad, n_vis), dtype=jnp.float32)

    grid = (b_pad // tb,)
    v_out = pl.pallas_call(
        functools.partial(rbm_gibbs_kernel, k=k),
        out_shape=jax.ShapeDtypeStruct((b_pad, n_vis), jnp.float32),
        grid=grid,
        in_specs=[
            pl.BlockSpec((tb, n_vis), lambda i: (i, 0)),             # v (batch tile)
            pl.BlockSpec((n_vis, n_hin), lambda i: (0, 0)),          # W.T (bf16)
            pl.BlockSpec((n_hin, n_vis), lambda i: (0, 0)),          # W (bf16)
            pl.BlockSpec((1, n_vis), lambda i: (0, 0)),              # v_bias
            pl.BlockSpec((1, n_hin), lambda i: (0, 0)),              # h_bias
            pl.BlockSpec((k + 1, tb, n_hin), lambda i: (0, i, 0)),   # hidden noise
            pl.BlockSpec((k, tb, n_vis), lambda i: (0, i, 0)),       # visible noise
        ],
        out_specs=pl.BlockSpec((tb, n_vis), lambda i: (i, 0)),
        compiler_params=pltpu.CompilerParams(
            dimension_semantics=("parallel",),
            vmem_limit_bytes=_vmem_budget_bytes(tb, n_vis, n_hin, k),
        ),
    )(v_f32, wt_bf, w_bf, vb2, hb2, u_h, u_v)

    if b_pad != B:
        v_out = v_out[:B]
    return v, v_out


if __name__ == "__main__":
    # Small shapes consistent with RBM(n_vis, n_hin, k):
    batch, n_vis, n_hin, k = 8, 256, 128, 5

    key = jax.random.PRNGKey(0)
    k_w, k_v, k_noise = jax.random.split(key, 3)

    # Deterministic parameter init mirroring __init__:
    #   W ~ 0.01 * randn(n_hin, n_vis), v_bias = 0, h_bias = 0
    W = 0.01 * jax.random.normal(k_w, (n_hin, n_vis), dtype=jnp.float32)
    v_bias = jnp.zeros((n_vis,), dtype=jnp.float32)
    h_bias = jnp.zeros((n_hin,), dtype=jnp.float32)

    # Binary visible units (MNIST-style binarized input).
    v = (jax.random.uniform(k_v, (batch, n_vis)) < 0.5).astype(jnp.float32)

    v_in, v_k = rbm_forward(v, W, v_bias, h_bias, key=k_noise, k=k)
    jax.block_until_ready(v_k)

    assert v_in.shape == (batch, n_vis)
    assert v_k.shape == (batch, n_vis)
    # Sampled visibles must be binary {0, 1}.
    assert bool(jnp.all((v_k == 0.0) | (v_k == 1.0)))

    print("KERNEL_OK")
</pallas_src>

<mosaic_0001>
module attributes {stable_mosaic.version = 11 : i64} {
  func.func @rbm_gibbs_kernel(%arg0: i32, %arg1: memref<8x256xf32, #tpu.memory_space<vmem>>, %arg2: memref<256x128xbf16, #tpu.memory_space<vmem>>, %arg3: memref<128x256xbf16, #tpu.memory_space<vmem>>, %arg4: memref<1x256xf32, #tpu.memory_space<vmem>>, %arg5: memref<1x128xf32, #tpu.memory_space<vmem>>, %arg6: memref<6x8x128xf32, #tpu.memory_space<vmem>>, %arg7: memref<5x8x256xf32, #tpu.memory_space<vmem>>, %arg8: memref<8x256xf32, #tpu.memory_space<vmem>>) attributes {dimension_semantics = [#tpu.dimension_semantics<parallel>], iteration_bounds = array<i64: 1>, scalar_prefetch = 0 : i64, scratch_operands = 0 : i64, tpu.core_type = #tpu.core_type<tc>, window_params = [{transform_indices = @transform_0, window_bounds = array<i64: 8, 256>}, {pipeline_mode = #tpu.pipeline_mode<synchronous>, transform_indices = @transform_1, window_bounds = array<i64: 256, 128>}, {pipeline_mode = #tpu.pipeline_mode<synchronous>, transform_indices = @transform_2, window_bounds = array<i64: 128, 256>}, {pipeline_mode = #tpu.pipeline_mode<synchronous>, transform_indices = @transform_3, window_bounds = array<i64: 1, 256>}, {pipeline_mode = #tpu.pipeline_mode<synchronous>, transform_indices = @transform_4, window_bounds = array<i64: 1, 128>}, {transform_indices = @transform_5, window_bounds = array<i64: 6, 8, 128>}, {transform_indices = @transform_6, window_bounds = array<i64: 5, 8, 256>}, {transform_indices = @transform_7, window_bounds = array<i64: 8, 256>}]} {
    %c0 = arith.constant 0 : index
    %c0_0 = arith.constant 0 : index
    %0 = vector.load %arg2[%c0, %c0_0] : memref<256x128xbf16, #tpu.memory_space<vmem>>, vector<256x128xbf16>
    %c0_1 = arith.constant 0 : index
    %c0_2 = arith.constant 0 : index
    %1 = vector.load %arg3[%c0_1, %c0_2] : memref<128x256xbf16, #tpu.memory_space<vmem>>, vector<128x256xbf16>
    %c0_3 = arith.constant 0 : index
    %c0_4 = arith.constant 0 : index
    %2 = vector.load %arg4[%c0_3, %c0_4] : memref<1x256xf32, #tpu.memory_space<vmem>>, vector<1x256xf32>
    %c0_5 = arith.constant 0 : index
    %c0_6 = arith.constant 0 : index
    %3 = vector.load %arg5[%c0_5, %c0_6] : memref<1x128xf32, #tpu.memory_space<vmem>>, vector<1x128xf32>
    %c0_7 = arith.constant 0 : index
    %c0_8 = arith.constant 0 : index
    %4 = vector.load %arg1[%c0_7, %c0_8] : memref<8x256xf32, #tpu.memory_space<vmem>>, vector<8x256xf32>
    %5 = arith.truncf %4 : vector<8x256xf32> to vector<8x256xbf16>
    %c0_9 = arith.constant 0 : index
    %c0_10 = arith.constant 0 : index
    %c0_11 = arith.constant 0 : index
    %6 = vector.load %arg6[%c0_9, %c0_10, %c0_11] : memref<6x8x128xf32, #tpu.memory_space<vmem>>, vector<1x8x128xf32>
    %7 = vector.shape_cast %6 : vector<1x8x128xf32> to vector<8x128xf32>
    %cst = arith.constant dense<0.000000e+00> : vector<8x128xf32>
    %8 = tpu.matmul %5, %0, %cst {dimension_numbers = #tpu.dot_dimension_numbers<[1], [0], [0], [1], [0, 0, 1, 1], [], []>} : vector<8x256xbf16>, vector<256x128xbf16>, vector<8x128xf32> -> vector<8x128xf32>
    %9 = vector.broadcast %3 : vector<1x128xf32> to vector<8x128xf32>
    %10 = arith.addf %8, %9 : vector<8x128xf32>
    %11 = arith.negf %10 : vector<8x128xf32>
    %12 = math.exp %11 : vector<8x128xf32>
    %cst_12 = arith.constant 1.000000e+00 : f32
    %13 = vector.broadcast %cst_12 : f32 to vector<8x128xf32>
    %14 = arith.addf %13, %12 : vector<8x128xf32>
    %15 = arith.divf %13, %14 : vector<8x128xf32>
    %16 = arith.cmpf ogt, %15, %7 : vector<8x128xf32>
    %cst_13 = arith.constant 1.000000e+00 : f32
    %cst_14 = arith.constant 0.000000e+00 : f32
    %17 = vector.broadcast %cst_13 : f32 to vector<8x128xf32>
    %18 = vector.broadcast %cst_14 : f32 to vector<8x128xf32>
    %19 = arith.select %16, %17, %18 : vector<8x128xi1>, vector<8x128xf32>
    %20 = arith.truncf %19 : vector<8x128xf32> to vector<8x128xbf16>
    %c0_15 = arith.constant 0 : index
    %c0_16 = arith.constant 0 : index
    %c0_17 = arith.constant 0 : index
    %21 = vector.load %arg7[%c0_15, %c0_16, %c0_17] : memref<5x8x256xf32, #tpu.memory_space<vmem>>, vector<1x8x256xf32>
    %22 = vector.shape_cast %21 : vector<1x8x256xf32> to vector<8x256xf32>
    %cst_18 = arith.constant dense<0.000000e+00> : vector<8x256xf32>
    %23 = tpu.matmul %20, %1, %cst_18 {dimension_numbers = #tpu.dot_dimension_numbers<[1], [0], [0], [1], [0, 0, 1, 1], [], []>} : vector<8x128xbf16>, vector<128x256xbf16>, vector<8x256xf32> -> vector<8x256xf32>
    %24 = vector.broadcast %2 : vector<1x256xf32> to vector<8x256xf32>
    %25 = arith.addf %23, %24 : vector<8x256xf32>
    %26 = arith.negf %25 : vector<8x256xf32>
    %27 = math.exp %26 : vector<8x256xf32>
    %cst_19 = arith.constant 1.000000e+00 : f32
    %28 = vector.broadcast %cst_19 : f32 to vector<8x256xf32>
    %29 = arith.addf %28, %27 : vector<8x256xf32>
    %30 = arith.divf %28, %29 : vector<8x256xf32>
    %31 = arith.cmpf ogt, %30, %22 : vector<8x256xf32>
    %cst_20 = arith.constant 1.000000e+00 : f32
    %cst_21 = arith.constant 0.000000e+00 : f32
    %32 = vector.broadcast %cst_20 : f32 to vector<8x256xf32>
    %33 = vector.broadcast %cst_21 : f32 to vector<8x256xf32>
    %34 = arith.select %31, %32, %33 : vector<8x256xi1>, vector<8x256xf32>
    %35 = arith.truncf %34 : vector<8x256xf32> to vector<8x256xbf16>
    %c1 = arith.constant 1 : index
    %c0_22 = arith.constant 0 : index
    %c0_23 = arith.constant 0 : index
    %36 = vector.load %arg6[%c1, %c0_22, %c0_23] : memref<6x8x128xf32, #tpu.memory_space<vmem>>, vector<1x8x128xf32>
    %37 = vector.shape_cast %36 : vector<1x8x128xf32> to vector<8x128xf32>
    %cst_24 = arith.constant dense<0.000000e+00> : vector<8x128xf32>
    %38 = tpu.matmul %35, %0, %cst_24 {dimension_numbers = #tpu.dot_dimension_numbers<[1], [0], [0], [1], [0, 0, 1, 1], [], []>} : vector<8x256xbf16>, vector<256x128xbf16>, vector<8x128xf32> -> vector<8x128xf32>
    %39 = vector.broadcast %3 : vector<1x128xf32> to vector<8x128xf32>
    %40 = arith.addf %38, %39 : vector<8x128xf32>
    %41 = arith.negf %40 : vector<8x128xf32>
    %42 = math.exp %41 : vector<8x128xf32>
    %cst_25 = arith.constant 1.000000e+00 : f32
    %43 = vector.broadcast %cst_25 : f32 to vector<8x128xf32>
    %44 = arith.addf %43, %42 : vector<8x128xf32>
    %45 = arith.divf %43, %44 : vector<8x128xf32>
    %46 = arith.cmpf ogt, %45, %37 : vector<8x128xf32>
    %cst_26 = arith.constant 1.000000e+00 : f32
    %cst_27 = arith.constant 0.000000e+00 : f32
    %47 = vector.broadcast %cst_26 : f32 to vector<8x128xf32>
    %48 = vector.broadcast %cst_27 : f32 to vector<8x128xf32>
    %49 = arith.select %46, %47, %48 : vector<8x128xi1>, vector<8x128xf32>
    %50 = arith.truncf %49 : vector<8x128xf32> to vector<8x128xbf16>
    %c1_28 = arith.constant 1 : index
    %c0_29 = arith.constant 0 : index
    %c0_30 = arith.constant 0 : index
    %51 = vector.load %arg7[%c1_28, %c0_29, %c0_30] : memref<5x8x256xf32, #tpu.memory_space<vmem>>, vector<1x8x256xf32>
    %52 = vector.shape_cast %51 : vector<1x8x256xf32> to vector<8x256xf32>
    %cst_31 = arith.constant dense<0.000000e+00> : vector<8x256xf32>
    %53 = tpu.matmul %50, %1, %cst_31 {dimension_numbers = #tpu.dot_dimension_numbers<[1], [0], [0], [1], [0, 0, 1, 1], [], []>} : vector<8x128xbf16>, vector<128x256xbf16>, vector<8x256xf32> -> vector<8x256xf32>
    %54 = vector.broadcast %2 : vector<1x256xf32> to vector<8x256xf32>
    %55 = arith.addf %53, %54 : vector<8x256xf32>
    %56 = arith.negf %55 : vector<8x256xf32>
    %57 = math.exp %56 : vector<8x256xf32>
    %cst_32 = arith.constant 1.000000e+00 : f32
    %58 = vector.broadcast %cst_32 : f32 to vector<8x256xf32>
    %59 = arith.addf %58, %57 : vector<8x256xf32>
    %60 = arith.divf %58, %59 : vector<8x256xf32>
    %61 = arith.cmpf ogt, %60, %52 : vector<8x256xf32>
    %cst_33 = arith.constant 1.000000e+00 : f32
    %cst_34 = arith.constant 0.000000e+00 : f32
    %62 = vector.broadcast %cst_33 : f32 to vector<8x256xf32>
    %63 = vector.broadcast %cst_34 : f32 to vector<8x256xf32>
    %64 = arith.select %61, %62, %63 : vector<8x256xi1>, vector<8x256xf32>
    %65 = arith.truncf %64 : vector<8x256xf32> to vector<8x256xbf16>
    %c2 = arith.constant 2 : index
    %c0_35 = arith.constant 0 : index
    %c0_36 = arith.constant 0 : index
    %66 = vector.load %arg6[%c2, %c0_35, %c0_36] : memref<6x8x128xf32, #tpu.memory_space<vmem>>, vector<1x8x128xf32>
    %67 = vector.shape_cast %66 : vector<1x8x128xf32> to vector<8x128xf32>
    %cst_37 = arith.constant dense<0.000000e+00> : vector<8x128xf32>
    %68 = tpu.matmul %65, %0, %cst_37 {dimension_numbers = #tpu.dot_dimension_numbers<[1], [0], [0], [1], [0, 0, 1, 1], [], []>} : vector<8x256xbf16>, vector<256x128xbf16>, vector<8x128xf32> -> vector<8x128xf32>
    %69 = vector.broadcast %3 : vector<1x128xf32> to vector<8x128xf32>
    %70 = arith.addf %68, %69 : vector<8x128xf32>
    %71 = arith.negf %70 : vector<8x128xf32>
    %72 = math.exp %71 : vector<8x128xf32>
    %cst_38 = arith.constant 1.000000e+00 : f32
    %73 = vector.broadcast %cst_38 : f32 to vector<8x128xf32>
    %74 = arith.addf %73, %72 : vector<8x128xf32>
    %75 = arith.divf %73, %74 : vector<8x128xf32>
    %76 = arith.cmpf ogt, %75, %67 : vector<8x128xf32>
    %cst_39 = arith.constant 1.000000e+00 : f32
    %cst_40 = arith.constant 0.000000e+00 : f32
    %77 = vector.broadcast %cst_39 : f32 to vector<8x128xf32>
    %78 = vector.broadcast %cst_40 : f32 to vector<8x128xf32>
    %79 = arith.select %76, %77, %78 : vector<8x128xi1>, vector<8x128xf32>
    %80 = arith.truncf %79 : vector<8x128xf32> to vector<8x128xbf16>
    %c2_41 = arith.constant 2 : index
    %c0_42 = arith.constant 0 : index
    %c0_43 = arith.constant 0 : index
    %81 = vector.load %arg7[%c2_41, %c0_42, %c0_43] : memref<5x8x256xf32, #tpu.memory_space<vmem>>, vector<1x8x256xf32>
    %82 = vector.shape_cast %81 : vector<1x8x256xf32> to vector<8x256xf32>
    %cst_44 = arith.constant dense<0.000000e+00> : vector<8x256xf32>
    %83 = tpu.matmul %80, %1, %cst_44 {dimension_numbers = #tpu.dot_dimension_numbers<[1], [0], [0], [1], [0, 0, 1, 1], [], []>} : vector<8x128xbf16>, vector<128x256xbf16>, vector<8x256xf32> -> vector<8x256xf32>
    %84 = vector.broadcast %2 : vector<1x256xf32> to vector<8x256xf32>
    %85 = arith.addf %83, %84 : vector<8x256xf32>
    %86 = arith.negf %85 : vector<8x256xf32>
    %87 = math.exp %86 : vector<8x256xf32>
    %cst_45 = arith.constant 1.000000e+00 : f32
    %88 = vector.broadcast %cst_45 : f32 to vector<8x256xf32>
    %89 = arith.addf %88, %87 : vector<8x256xf32>
    %90 = arith.divf %88, %89 : vector<8x256xf32>
    %91 = arith.cmpf ogt, %90, %82 : vector<8x256xf32>
    %cst_46 = arith.constant 1.000000e+00 : f32
    %cst_47 = arith.constant 0.000000e+00 : f32
    %92 = vector.broadcast %cst_46 : f32 to vector<8x256xf32>
    %93 = vector.broadcast %cst_47 : f32 to vector<8x256xf32>
    %94 = arith.select %91, %92, %93 : vector<8x256xi1>, vector<8x256xf32>
    %95 = arith.truncf %94 : vector<8x256xf32> to vector<8x256xbf16>
    %c3 = arith.constant 3 : index
    %c0_48 = arith.constant 0 : index
    %c0_49 = arith.constant 0 : index
    %96 = vector.load %arg6[%c3, %c0_48, %c0_49] : memref<6x8x128xf32, #tpu.memory_space<vmem>>, vector<1x8x128xf32>
    %97 = vector.shape_cast %96 : vector<1x8x128xf32> to vector<8x128xf32>
    %cst_50 = arith.constant dense<0.000000e+00> : vector<8x128xf32>
    %98 = tpu.matmul %95, %0, %cst_50 {dimension_numbers = #tpu.dot_dimension_numbers<[1], [0], [0], [1], [0, 0, 1, 1], [], []>} : vector<8x256xbf16>, vector<256x128xbf16>, vector<8x128xf32> -> vector<8x128xf32>
    %99 = vector.broadcast %3 : vector<1x128xf32> to vector<8x128xf32>
    %100 = arith.addf %98, %99 : vector<8x128xf32>
    %101 = arith.negf %100 : vector<8x128xf32>
    %102 = math.exp %101 : vector<8x128xf32>
    %cst_51 = arith.constant 1.000000e+00 : f32
    %103 = vector.broadcast %cst_51 : f32 to vector<8x128xf32>
    %104 = arith.addf %103, %102 : vector<8x128xf32>
    %105 = arith.divf %103, %104 : vector<8x128xf32>
    %106 = arith.cmpf ogt, %105, %97 : vector<8x128xf32>
    %cst_52 = arith.constant 1.000000e+00 : f32
    %cst_53 = arith.constant 0.000000e+00 : f32
    %107 = vector.broadcast %cst_52 : f32 to vector<8x128xf32>
    %108 = vector.broadcast %cst_53 : f32 to vector<8x128xf32>
    %109 = arith.select %106, %107, %108 : vector<8x128xi1>, vector<8x128xf32>
    %110 = arith.truncf %109 : vector<8x128xf32> to vector<8x128xbf16>
    %c3_54 = arith.constant 3 : index
    %c0_55 = arith.constant 0 : index
    %c0_56 = arith.constant 0 : index
    %111 = vector.load %arg7[%c3_54, %c0_55, %c0_56] : memref<5x8x256xf32, #tpu.memory_space<vmem>>, vector<1x8x256xf32>
    %112 = vector.shape_cast %111 : vector<1x8x256xf32> to vector<8x256xf32>
    %cst_57 = arith.constant dense<0.000000e+00> : vector<8x256xf32>
    %113 = tpu.matmul %110, %1, %cst_57 {dimension_numbers = #tpu.dot_dimension_numbers<[1], [0], [0], [1], [0, 0, 1, 1], [], []>} : vector<8x128xbf16>, vector<128x256xbf16>, vector<8x256xf32> -> vector<8x256xf32>
    %114 = vector.broadcast %2 : vector<1x256xf32> to vector<8x256xf32>
    %115 = arith.addf %113, %114 : vector<8x256xf32>
    %116 = arith.negf %115 : vector<8x256xf32>
    %117 = math.exp %116 : vector<8x256xf32>
    %cst_58 = arith.constant 1.000000e+00 : f32
    %118 = vector.broadcast %cst_58 : f32 to vector<8x256xf32>
    %119 = arith.addf %118, %117 : vector<8x256xf32>
    %120 = arith.divf %118, %119 : vector<8x256xf32>
    %121 = arith.cmpf ogt, %120, %112 : vector<8x256xf32>
    %cst_59 = arith.constant 1.000000e+00 : f32
    %cst_60 = arith.constant 0.000000e+00 : f32
    %122 = vector.broadcast %cst_59 : f32 to vector<8x256xf32>
    %123 = vector.broadcast %cst_60 : f32 to vector<8x256xf32>
    %124 = arith.select %121, %122, %123 : vector<8x256xi1>, vector<8x256xf32>
    %125 = arith.truncf %124 : vector<8x256xf32> to vector<8x256xbf16>
    %c4 = arith.constant 4 : index
    %c0_61 = arith.constant 0 : index
    %c0_62 = arith.constant 0 : index
    %126 = vector.load %arg6[%c4, %c0_61, %c0_62] : memref<6x8x128xf32, #tpu.memory_space<vmem>>, vector<1x8x128xf32>
    %127 = vector.shape_cast %126 : vector<1x8x128xf32> to vector<8x128xf32>
    %cst_63 = arith.constant dense<0.000000e+00> : vector<8x128xf32>
    %128 = tpu.matmul %125, %0, %cst_63 {dimension_numbers = #tpu.dot_dimension_numbers<[1], [0], [0], [1], [0, 0, 1, 1], [], []>} : vector<8x256xbf16>, vector<256x128xbf16>, vector<8x128xf32> -> vector<8x128xf32>
    %129 = vector.broadcast %3 : vector<1x128xf32> to vector<8x128xf32>
    %130 = arith.addf %128, %129 : vector<8x128xf32>
    %131 = arith.negf %130 : vector<8x128xf32>
    %132 = math.exp %131 : vector<8x128xf32>
    %cst_64 = arith.constant 1.000000e+00 : f32
    %133 = vector.broadcast %cst_64 : f32 to vector<8x128xf32>
    %134 = arith.addf %133, %132 : vector<8x128xf32>
    %135 = arith.divf %133, %134 : vector<8x128xf32>
    %136 = arith.cmpf ogt, %135, %127 : vector<8x128xf32>
    %cst_65 = arith.constant 1.000000e+00 : f32
    %cst_66 = arith.constant 0.000000e+00 : f32
    %137 = vector.broadcast %cst_65 : f32 to vector<8x128xf32>
    %138 = vector.broadcast %cst_66 : f32 to vector<8x128xf32>
    %139 = arith.select %136, %137, %138 : vector<8x128xi1>, vector<8x128xf32>
    %140 = arith.truncf %139 : vector<8x128xf32> to vector<8x128xbf16>
    %c4_67 = arith.constant 4 : index
    %c0_68 = arith.constant 0 : index
    %c0_69 = arith.constant 0 : index
    %141 = vector.load %arg7[%c4_67, %c0_68, %c0_69] : memref<5x8x256xf32, #tpu.memory_space<vmem>>, vector<1x8x256xf32>
    %142 = vector.shape_cast %141 : vector<1x8x256xf32> to vector<8x256xf32>
    %cst_70 = arith.constant dense<0.000000e+00> : vector<8x256xf32>
    %143 = tpu.matmul %140, %1, %cst_70 {dimension_numbers = #tpu.dot_dimension_numbers<[1], [0], [0], [1], [0, 0, 1, 1], [], []>} : vector<8x128xbf16>, vector<128x256xbf16>, vector<8x256xf32> -> vector<8x256xf32>
    %144 = vector.broadcast %2 : vector<1x256xf32> to vector<8x256xf32>
    %145 = arith.addf %143, %144 : vector<8x256xf32>
    %146 = arith.negf %145 : vector<8x256xf32>
    %147 = math.exp %146 : vector<8x256xf32>
    %cst_71 = arith.constant 1.000000e+00 : f32
    %148 = vector.broadcast %cst_71 : f32 to vector<8x256xf32>
    %149 = arith.addf %148, %147 : vector<8x256xf32>
    %150 = arith.divf %148, %149 : vector<8x256xf32>
    %151 = arith.cmpf ogt, %150, %142 : vector<8x256xf32>
    %cst_72 = arith.constant 1.000000e+00 : f32
    %cst_73 = arith.constant 0.000000e+00 : f32
    %152 = vector.broadcast %cst_72 : f32 to vector<8x256xf32>
    %153 = vector.broadcast %cst_73 : f32 to vector<8x256xf32>
    %154 = arith.select %151, %152, %153 : vector<8x256xi1>, vector<8x256xf32>
    %155 = arith.truncf %154 : vector<8x256xf32> to vector<8x256xbf16>
    %156 = arith.extf %155 : vector<8x256xbf16> to vector<8x256xf32>
    %c0_74 = arith.constant 0 : index
    %c0_75 = arith.constant 0 : index
    %157 = vector.load %arg8[%c0_74, %c0_75] : memref<8x256xf32, #tpu.memory_space<vmem>>, vector<8x256xf32>
    tpu.vector_store %arg8[%c0_74, %c0_75], %156 {strides = array<i32>} : memref<8x256xf32, #tpu.memory_space<vmem>>, vector<8x256xf32>,
    return
  }
  func.func @transform_0(%arg0: i32) -> (i32, i32) {
    %c0_i32 = arith.constant 0 : i32
    %c0_i32_0 = arith.constant 0 : i32
    return %arg0, %c0_i32 : i32, i32
  }
  func.func @transform_1(%arg0: i32) -> (i32, i32) {
    %c0_i32 = arith.constant 0 : i32
    %c0_i32_0 = arith.constant 0 : i32
    %c0_i32_1 = arith.constant 0 : i32
    return %c0_i32, %c0_i32_0 : i32, i32
  }
  func.func @transform_2(%arg0: i32) -> (i32, i32) {
    %c0_i32 = arith.constant 0 : i32
    %c0_i32_0 = arith.constant 0 : i32
    %c0_i32_1 = arith.constant 0 : i32
    return %c0_i32, %c0_i32_0 : i32, i32
  }
  func.func @transform_3(%arg0: i32) -> (i32, i32) {
    %c0_i32 = arith.constant 0 : i32
    %c0_i32_0 = arith.constant 0 : i32
    %c0_i32_1 = arith.constant 0 : i32
    return %c0_i32, %c0_i32_0 : i32, i32
  }
  func.func @transform_4(%arg0: i32) -> (i32, i32) {
    %c0_i32 = arith.constant 0 : i32
    %c0_i32_0 = arith.constant 0 : i32
    %c0_i32_1 = arith.constant 0 : i32
    return %c0_i32, %c0_i32_0 : i32, i32
  }
  func.func @transform_5(%arg0: i32) -> (i32, i32, i32) {
    %c0_i32 = arith.constant 0 : i32
    %c0_i32_0 = arith.constant 0 : i32
    %c0_i32_1 = arith.constant 0 : i32
    return %c0_i32, %arg0, %c0_i32_0 : i32, i32, i32
  }
  func.func @transform_6(%arg0: i32) -> (i32, i32, i32) {
    %c0_i32 = arith.constant 0 : i32
    %c0_i32_0 = arith.constant 0 : i32
    %c0_i32_1 = arith.constant 0 : i32
    return %c0_i32, %arg0, %c0_i32_0 : i32, i32, i32
  }
  func.func @transform_7(%arg0: i32) -> (i32, i32) {
    %c0_i32 = arith.constant 0 : i32
    %c0_i32_0 = arith.constant 0 : i32
    return %arg0, %c0_i32 : i32, i32
  }
}

</mosaic_0001>

<bundles_post_ra>
// kernel: tpu_custom_call.1
= control target key start
LH: loop header
LB: loop body
LE: loop exit
PB: predicated region body
PF: predicated region fallthrough
CT: control target
= control target key end

     0   :  { %12 = vsyncpa [#allocation3], 0  ;;  %s1756_s0 = inlined_call_operand.hbm [shape: f32[8,256], index: 0, kind: input, shape index: {}]   ;;  %s1757_s1 = inlined_call_operand.hbm [shape: bf16[256,128], index: 1, kind: input, shape index: {}]   ;;  %s1758_s2 = inlined_call_operand.hbm [shape: bf16[128,256], index: 2, kind: input, shape index: {}]   ;;  %s1759_s3 = inlined_call_operand.vmem [shape: f32[1,256], index: 3, kind: input, shape index: {}]   ;;  %s1760_s4 = inlined_call_operand.vmem [shape: f32[1,128], index: 4, kind: input, shape index: {}]   ;;  %s1761_s5 = inlined_call_operand.hbm [shape: f32[6,8,128], index: 5, kind: input, shape index: {}]   ;;  %s1762_s6 = inlined_call_operand.hbm [shape: f32[5,8,256], index: 6, kind: input, shape index: {}]   ;;  %s1763_s7 = inlined_call_operand.hbm [shape: f32[8,256], index: 7, kind: output, shape index: {}]  }
   0x1   :  { %13 = vsyncpa [#allocation6], 0 }
   0x2   :  { %14 = vsyncpa [#allocation9], 0  ;;  %s31_s26 = sshll.u32 %s1757_s1, 4  ;;  %s32_s26 = int_to_ptr.hbm [resolvable:$true] %s31_s26 }
   0x3   :  { %15 = vsyncpa [#allocation4], 0  ;;  %s1415_s27 = smov [#allocation5]   ;;  %s1416_s29 = smov 64  }
   0x4   :  { %s33_s28 = sshll.u32 %s1415_s27, 4  ;;  %s1417_s30 = smov 4   ;;  %s34_s28 = int_to_ptr.vmem [resolvable:$true] %s33_s28 }
   0x5   :  { %39 = dma.hbm_to_vmem [thread:$0]  %s32_s26, 2048, %s34_s28, [#allocation6], %s1416_s29, %s1416_s29, %s1417_s30  }
   0x6   :  { %s61_s10 = sshll.u32 %s1761_s5, 4  ;;  %s1418_s11 = smov [#allocation8]   ;;  %s62_s10 = int_to_ptr.hbm [resolvable:$true] %s61_s10 }
   0x7   :  { %s63_s12 = sshll.u32 %s1418_s11, 4  ;;  %s21_s15 = sshll.u32 %s1756_s0, 4  ;;  %s64_s12 = int_to_ptr.vmem [resolvable:$true] %s63_s12  ;;  %s22_s15 = int_to_ptr.hbm [resolvable:$true] %s21_s15 }
   0x8   :  { %s1419_s1 = smov 128   ;;  %s1420_s16 = smov 8  }
   0x9   :  { %69 = dma.hbm_to_vmem [thread:$0]  %s62_s10, 768, %s64_s12, [#allocation9], %s1419_s1, %s1419_s1, %s1420_s16  }
   0xa   :  { %s44_s19 = sshll.u32 %s1758_s2, 4  ;;  %s1421_s20 = smov [#allocation2]   ;;  %s45_s19 = int_to_ptr.hbm [resolvable:$true] %s44_s19 }
   0xb   :  { %s23_s21 = sshll.u32 %s1421_s20, 4  ;;  %s1422_s5 = smov [#allocation7]   ;;  %s24_s21 = int_to_ptr.vmem [resolvable:$true] %s23_s21 }
   0xc   :  { %26 = dma.hbm_to_vmem [thread:$0]  %s22_s15, 256, %s24_s21, [#allocation3]  }
   0xd   :  { %s46_s22 = sshll.u32 %s1422_s5, 4  ;;  %s74_s0 = sshll.u32 %s1762_s6, 4  ;;  %s47_s22 = int_to_ptr.vmem [resolvable:$true] %s46_s22  ;;  %s75_s0 = int_to_ptr.hbm [resolvable:$true] %s74_s0 }
   0xe   :  { %52 = dma.hbm_to_vmem [thread:$0]  %s45_s19, 2048, %s47_s22, [#allocation6], %s1419_s1, %s1419_s1, %s1420_s16  }
   0xf   :  { %s1423_s25 = smov [#allocation10]   ;;  %s1424_s27 = smov 256  }
  0x10   :  { %s76_s26 = sshll.u32 %s1423_s25, 4  ;;  %s1425_s28 = smov 16   ;;  %s77_s26 = int_to_ptr.vmem [resolvable:$true] %s76_s26 }
  0x11   :  { %82 = dma.hbm_to_vmem [thread:$0]  %s75_s0, 1280, %s77_s26, [#allocation9], %s1424_s27, %s1424_s27, %s1425_s28  }
  0x12   :  { %1407 = dma.done.wait [#allocation3], 256  }
  0x13   :  { %1408 = vsyncadd [#allocation3], 4294967040 }
  0x14   :  { %1409 = dma.done.wait [#allocation6], 4096  }
  0x15   :  { %1410 = vsyncadd [#allocation6], 4294963200 }
  0x16   :  { %1411 = dma.done.wait [#allocation9], 2048  }
  0x17   :  { %1412 = vsyncadd [#allocation9], 4294965248  ;;  %v1484_v0 = vld [vmem:[#allocation5 + $0x38] sm:$0xff]  ;;  %v1490_v2 = vld [vmem:[#allocation5 + $0x30] sm:$0xff]  ;;  %s965_s10 = sshll.u32 %s1763_s7, 4  ;;  %s966_s10 = int_to_ptr.hbm [resolvable:$true] %s965_s10 }
  0x18   :  { %v1486_v1 = vld [vmem:[#allocation5 + $0x78] sm:$0xff]  ;;  %257 = vmatpush.bf16.msra.mxu0 %v1484_v0  ;;  %v1492_v3 = vld [vmem:[#allocation5 + $0x70] sm:$0xff]  ;;  %v1496_v4 = vld [vmem:[#allocation5 + $0x28] sm:$0xff] }
  0x19   :  { %270 = vmatpush.bf16.msra.mxu1 %v1486_v1  ;;  %v1498_v5 = vld [vmem:[#allocation5 + $0x68] sm:$0xff]  ;;  %v1502_v6 = vld [vmem:[#allocation5 + $0x20] sm:$0xff]  ;;  %v1508_v8 = vld [vmem:[#allocation5 + $0x18] sm:$0xff] }
  0x1a   :  { %v1504_v7 = vld [vmem:[#allocation5 + $0x60] sm:$0xff]  ;;  %v1510_v9 = vld [vmem:[#allocation5 + $0x58] sm:$0xff]  ;;  %v1514_v10 = vld [vmem:[#allocation5 + $0x10] sm:$0xff] }
  0x1b   :  { %v1516_v11 = vld [vmem:[#allocation5 + $0x50] sm:$0xff]  ;;  %v1520_v12 = vld [vmem:[#allocation5 + $0x8] sm:$0xff]  ;;  %v1524_v14 = vld [vmem:[#allocation5] sm:$0xff] }
  0x1c   :  { %258 = vmatpush.bf16.msra.mxu0 %v1490_v2  ;;  %v1522_v13 = vld [vmem:[#allocation5 + $0x48] sm:$0xff]  ;;  %v1528_v15 = vld [vmem:[#allocation5 + $0x40] sm:$0xff]  ;;  %v153_v16 = vld [vmem:[#allocation2] sm:$0xff] }
  0x1d   :  { %271 = vmatpush.bf16.msra.mxu1 %v1492_v3  ;;  %v154_v17 = vld [vmem:[#allocation2 + $0x8] sm:$0xff]  ;;  %v155_v18 = vpack.c.bf16 %v153_v16, %v153_v16  ;;  %v1100_v20 = vld [vmem:[#allocation7 + $0x70] sm:$0xf]  ;;  %v1186_v22 = vld [vmem:[#allocation7 + $0x74] sm:$0xf] }
  0x1e   :  { %v156_v19 = vpack.c.bf16 %v154_v17, %v154_v17  ;;  %v1187_v21 = vld [vmem:[#allocation7 + $0x74] sm:$0xf0]  ;;  %v1102_v24 = vld [vmem:[#allocation7 + $0x78] sm:$0xf0]  ;;  %v1092_v26 = vld [vmem:[#allocation7 + $0x60] sm:$0xf] }
  0x1f   :  { %v1564_v23 = vor.u32 %v1187_v21, %v1100_v20  ;;  %v1566_v25 = vor.u32 %v1186_v22, %v1102_v24  ;;  %v1185_v27 = vld [vmem:[#allocation7 + $0x64] sm:$0xf0]  ;;  %v1184_v28 = vld [vmem:[#allocation7 + $0x64] sm:$0xf]  ;;  %v1094_v30 = vld [vmem:[#allocation7 + $0x68] sm:$0xf0] }
  0x20   :  { %259 = vmatpush.bf16.msra.mxu0 %v1496_v4  ;;  %v1570_v29 = vor.u32 %v1185_v27, %v1092_v26  ;;  %v1572_v31 = vor.u32 %v1184_v28, %v1094_v30  ;;  %v1084_v32 = vld [vmem:[#allocation7 + $0x50] sm:$0xf]  ;;  %v1183_v33 = vld [vmem:[#allocation7 + $0x54] sm:$0xf0]  ;;  %v1182_v34 = vld [vmem:[#allocation7 + $0x54] sm:$0xf] }
  0x21   :  { %272 = vmatpush.bf16.msra.mxu1 %v1498_v5  ;;  %392 = vmatpush.bf16.msra.mxu2 %v1564_v23  ;;  %v1576_v35 = vor.u32 %v1183_v33, %v1084_v32  ;;  %v1086_v36 = vld [vmem:[#allocation7 + $0x58] sm:$0xf0]  ;;  %v1076_v38 = vld [vmem:[#allocation7 + $0x40] sm:$0xf]  ;;  %v1181_v39 = vld [vmem:[#allocation7 + $0x44] sm:$0xf0] }
  0x22   :  { %405 = vmatpush.bf16.msra.mxu3 %v1566_v25  ;;  %v1578_v37 = vor.u32 %v1182_v34, %v1086_v36  ;;  %v1180_v40 = vld [vmem:[#allocation7 + $0x44] sm:$0xf]  ;;  %v1582_v41 = vor.u32 %v1181_v39, %v1076_v38  ;;  %v1078_v42 = vld [vmem:[#allocation7 + $0x48] sm:$0xf0]  ;;  %v1068_v44 = vld [vmem:[#allocation7 + $0x30] sm:$0xf] }
  0x23   :  { %v1584_v43 = vor.u32 %v1180_v40, %v1078_v42  ;;  %v1179_v45 = vld [vmem:[#allocation7 + $0x34] sm:$0xf0]  ;;  %v1178_v46 = vld [vmem:[#allocation7 + $0x34] sm:$0xf]  ;;  %v1070_v48 = vld [vmem:[#allocation7 + $0x38] sm:$0xf0] }
  0x24   :  { %260 = vmatpush.bf16.msra.mxu0 %v1502_v6  ;;  %v1588_v47 = vor.u32 %v1179_v45, %v1068_v44  ;;  %v1060_v49 = vld [vmem:[#allocation7 + $0x20] sm:$0xf]  ;;  %v1177_v50 = vld [vmem:[#allocation7 + $0x24] sm:$0xf0]  ;;  %v1590_v51 = vor.u32 %v1178_v46, %v1070_v48  ;;  %v1176_v52 = vld [vmem:[#allocation7 + $0x24] sm:$0xf] }
  0x25   :  { %273 = vmatpush.bf16.msra.mxu1 %v1504_v7  ;;  %393 = vmatpush.bf16.msra.mxu2 %v1570_v29  ;;  %v1062_v53 = vld [vmem:[#allocation7 + $0x28] sm:$0xf0]  ;;  %v1593_v54 = vor.u32 %v1177_v50, %v1060_v49  ;;  %v1052_v56 = vld [vmem:[#allocation7 + $0x10] sm:$0xf]  ;;  %v1175_v57 = vld [vmem:[#allocation7 + $0x14] sm:$0xf0] }
  0x26   :  { %406 = vmatpush.bf16.msra.mxu3 %v1572_v31  ;;  %v1596_v55 = vor.u32 %v1176_v52, %v1062_v53  ;;  %v1174_v58 = vld [vmem:[#allocation7 + $0x14] sm:$0xf]  ;;  %v1054_v59 = vld [vmem:[#allocation7 + $0x18] sm:$0xf0]  ;;  %v1599_v60 = vor.u32 %v1175_v57, %v1052_v56  ;;  %v1044_v62 = vld [vmem:[#allocation7] sm:$0xf] }
  0x27   :  { %v1602_v61 = vor.u32 %v1174_v58, %v1054_v59  ;;  %v1173_v63 = vld [vmem:[#allocation7 + $0x4] sm:$0xf0]  ;;  %v1172_v16 = vld [vmem:[#allocation7 + $0x4] sm:$0xf]  ;;  %v1046_v17 = vld [vmem:[#allocation7 + $0x8] sm:$0xf0] }
  0x28   :  { %261 = vmatpush.bf16.msra.mxu0 %v1508_v8  ;;  %v1613_v20 = vor.u32 %v1172_v16, %v1046_v17  ;;  %v157_v45 = vld [vmem:[#allocation8] sm:$0xff]  ;;  %v1426_v50 = vmov 1.0|1.0   ;;  %v151_v52 = vld [vmem:[%s1759_s3] sm:$0x3]  ;;  %s1427_s3 = smov [#allocation11]  }
  0x29   :  { %274 = vmatpush.bf16.msra.mxu1 %v1510_v9  ;;  %394 = vmatpush.bf16.msra.mxu2 %v1576_v35  ;;  %v1655_v53 = vperm.slane %v151_v52, 0  ;;  %v1657_v56 = vperm.slane %v151_v52, 1  ;;  %s963_s30 = sshll.u32 %s1427_s3, 4  ;;  %s964_s30 = int_to_ptr.vmem [resolvable:$true] %s963_s30 }
  0x2a   :  { %407 = vmatpush.bf16.msra.mxu3 %v1578_v37 }
  0x2c   :  { %262 = vmatpush.bf16.msra.mxu0 %v1514_v10 }
  0x2d   :  { %275 = vmatpush.bf16.msra.mxu1 %v1516_v11  ;;  %395 = vmatpush.bf16.msra.mxu2 %v1582_v41 }
  0x2e   :  { %408 = vmatpush.bf16.msra.mxu3 %v1584_v43 }
  0x30   :  { %263 = vmatpush.bf16.msra.mxu0 %v1520_v12 }
  0x31   :  { %276 = vmatpush.bf16.msra.mxu1 %v1522_v13  ;;  %396 = vmatpush.bf16.msra.mxu2 %v1588_v47 }
  0x32   :  { %409 = vmatpush.bf16.msra.mxu3 %v1590_v51 }
  0x34   :  { %264 = vmatpush.bf16.msra.mxu0 %v1524_v14 }
  0x35   :  { %277 = vmatpush.bf16.msra.mxu1 %v1528_v15  ;;  %397 = vmatpush.bf16.msra.mxu2 %v1593_v54 }
  0x36   :  { %410 = vmatpush.bf16.msra.mxu3 %v1596_v55 }
  0x37   :  { %265 = vmatmul.bf16.vlgmr.msra.gmra.mxu0 %v155_v18  ;;  %v1605_v18 = vor.u32 %v1173_v63, %v1044_v62 }
  0x38   :  { %464 = vmatpush.bf16.msrb.mxu0 %v1484_v0  ;;  %278 = vmatmul.bf16.vlgmr.msra.gmra.mxu1 %v156_v19  ;;  %v1610_v19 = vld [vmem:[%s1760_s4] ss:$0 sm:$0xff] }
  0x39   :  { %477 = vmatpush.bf16.msrb.mxu1 %v1486_v1  ;;  %398 = vmatpush.bf16.msra.mxu2 %v1599_v60 }
  0x3a   :  { %411 = vmatpush.bf16.msra.mxu3 %v1602_v61 }
  0x3c   :  { %465 = vmatpush.bf16.msrb.mxu0 %v1490_v2 }
  0x3d   :  { %478 = vmatpush.bf16.msrb.mxu1 %v1492_v3  ;;  %399 = vmatpush.bf16.msra.mxu2 %v1605_v18 }
  0x3e   :  { %412 = vmatpush.bf16.msra.mxu3 %v1613_v20 }
  0x40   :  { %466 = vmatpush.bf16.msrb.mxu0 %v1496_v4 }
  0x41   :  { %479 = vmatpush.bf16.msrb.mxu1 %v1498_v5  ;;  %515 = vmatpush.bf16.msrb.mxu2 %v1564_v23 }
  0x42   :  { %528 = vmatpush.bf16.msrb.mxu3 %v1566_v25 }
  0x44   :  { %467 = vmatpush.bf16.msrb.mxu0 %v1502_v6 }
  0x45   :  { %480 = vmatpush.bf16.msrb.mxu1 %v1504_v7  ;;  %516 = vmatpush.bf16.msrb.mxu2 %v1570_v29 }
  0x46   :  { %529 = vmatpush.bf16.msrb.mxu3 %v1572_v31 }
  0x48   :  { %468 = vmatpush.bf16.msrb.mxu0 %v1508_v8 }
  0x49   :  { %481 = vmatpush.bf16.msrb.mxu1 %v1510_v9  ;;  %517 = vmatpush.bf16.msrb.mxu2 %v1576_v35 }
  0x4a   :  { %530 = vmatpush.bf16.msrb.mxu3 %v1578_v37 }
  0x4c   :  { %469 = vmatpush.bf16.msrb.mxu0 %v1514_v10 }
  0x4d   :  { %482 = vmatpush.bf16.msrb.mxu1 %v1516_v11  ;;  %518 = vmatpush.bf16.msrb.mxu2 %v1582_v41 }
  0x4e   :  { %531 = vmatpush.bf16.msrb.mxu3 %v1584_v43 }
  0x50   :  { %470 = vmatpush.bf16.msrb.mxu0 %v1520_v12 }
  0x51   :  { %483 = vmatpush.bf16.msrb.mxu1 %v1522_v13  ;;  %519 = vmatpush.bf16.msrb.mxu2 %v1588_v47 }
  0x52   :  { %532 = vmatpush.bf16.msrb.mxu3 %v1590_v51 }
  0x54   :  { %471 = vmatpush.bf16.msrb.mxu0 %v1524_v14 }
  0x55   :  { %484 = vmatpush.bf16.msrb.mxu1 %v1528_v15  ;;  %520 = vmatpush.bf16.msrb.mxu2 %v1593_v54 }
  0x56   :  { %533 = vmatpush.bf16.msrb.mxu3 %v1596_v55 }
  0x58   :  { %587 = vmatpush.bf16.msra.mxu0 %v1484_v0 }
  0x59   :  { %600 = vmatpush.bf16.msra.mxu1 %v1486_v1  ;;  %521 = vmatpush.bf16.msrb.mxu2 %v1599_v60 }
  0x5a   :  { %534 = vmatpush.bf16.msrb.mxu3 %v1602_v61 }
  0x5c   :  { %588 = vmatpush.bf16.msra.mxu0 %v1490_v2 }
  0x5d   :  { %601 = vmatpush.bf16.msra.mxu1 %v1492_v3  ;;  %522 = vmatpush.bf16.msrb.mxu2 %v1605_v18 }
  0x5e   :  { %535 = vmatpush.bf16.msrb.mxu3 %v1613_v20 }
  0x60   :  { %589 = vmatpush.bf16.msra.mxu0 %v1496_v4 }
  0x61   :  { %602 = vmatpush.bf16.msra.mxu1 %v1498_v5 }
  0x64   :  { %590 = vmatpush.bf16.msra.mxu0 %v1502_v6 }
  0x65   :  { %603 = vmatpush.bf16.msra.mxu1 %v1504_v7 }
  0x68   :  { %591 = vmatpush.bf16.msra.mxu0 %v1508_v8 }
  0x69   :  { %604 = vmatpush.bf16.msra.mxu1 %v1510_v9 }
  0x6c   :  { %592 = vmatpush.bf16.msra.mxu0 %v1514_v10 }
  0x6d   :  { %605 = vmatpush.bf16.msra.mxu1 %v1516_v11 }
  0x70   :  { %593 = vmatpush.bf16.msra.mxu0 %v1520_v12 }
  0x71   :  { %606 = vmatpush.bf16.msra.mxu1 %v1522_v13 }
  0x74   :  { %594 = vmatpush.bf16.msra.mxu0 %v1524_v14 }
  0x75   :  { %607 = vmatpush.bf16.msra.mxu1 %v1528_v15 }
  0xb4   :  { %v266_v21 = vpop.f32.mrf.mxu0 }
  0xb5   :  { %v279_v22 = vpop.f32.mrf.mxu1  ;;  %v267_v24 = vadd.f32 %v1610_v19, %v266_v21 }
  0xb7   :  { %v280_v26 = vadd.f32 %v279_v22, %v267_v24 }
  0xb9   :  { %v1041_v27 = vmul.f32 -1.442695, %v280_v26 }
  0xbb   :  { %1203 = vpow2.f32 %v1041_v27 }
  0xbc   :  { %v268_v28 = vpop.f32.mrf.mxu0 }
  0xbd   :  { %v281_v30 = vpop.f32.mrf.mxu1 }
  0xc1   :  { %v1204_v32 = vpop.eup %1203 }
  0xc2   :  { %v286_v33 = vadd.f32 1.0, %v1204_v32 }
  0xc4   :  { %1205 = vrcp.f32 %v286_v33  ;;  %v298_v39 = vand.u32 2147483648, %v286_v33  ;;  %v296_v42 = vand.u32 2147483647, %v286_v33  ;;  %vm292_vm1 = vweird.f32 %v286_v33 }
  0xc6   :  { %v299_v46 = vor.u32 1.1754944e-38, %v298_v39  ;;  %vm297_vm3 = vcmp.eq.f32.partialorder %v296_v42, 8.507059e+37 }
  0xca   :  { %v1206_v34 = vpop.eup %1205 }
  0xcb   :  { %v288_v36 = vmul.f32 %v1206_v34, %v286_v33  ;;  %vm293_vm0 = vweird.f32 %v1206_v34 }
  0xcc   :  { %vm294_vm2 = vmor %vm292_vm1, %vm293_vm0 }
  0xcd   :  { %v289_v38 = vsub.f32 1.0, %v288_v36 }
  0xcf   :  { %v290_v40 = vmul.f32 %v1206_v34, %v289_v38 }
  0xd1   :  { %v291_v44 = vadd.f32 %v1206_v34, %v290_v40 }
  0xd3   :  { %v295_v48 = vsel %vm294_vm2, %v1206_v34, %v291_v44 }
  0xd4   :  { %v300_v49 = vsel %vm297_vm3, %v299_v46, %v295_v48  ;;  %v305_v48 = vld [vmem:[#allocation10] sm:$0xff] }
  0xd5   :  { %vm302_vm4 = vcmp.gt.f32.partialorder %v300_v49, %v157_v45 }
  0xd6   :  { %vm1106_vm5 = vmpackc.low %vm302_vm4, %vm302_vm4 }
  0xd7   :  { %1107 = vmatmul.msk.bf16.vlgmr.msra.gmra.mxu2 %vm1106_vm5, %v1426_v50  ;;  %1109 = vmatmul.msk.bf16.vlgmr.msra.gmra.mxu3 %vm1106_vm5, %v1426_v50 }
  0xd8   :  { %638 = vmatpush.bf16.msra.mxu2 %v1564_v23  ;;  %651 = vmatpush.bf16.msra.mxu3 %v1566_v25 }
  0xdc   :  { %639 = vmatpush.bf16.msra.mxu2 %v1570_v29  ;;  %652 = vmatpush.bf16.msra.mxu3 %v1572_v31 }
  0xe0   :  { %640 = vmatpush.bf16.msra.mxu2 %v1576_v35  ;;  %653 = vmatpush.bf16.msra.mxu3 %v1578_v37 }
  0xe4   :  { %641 = vmatpush.bf16.msra.mxu2 %v1582_v41  ;;  %654 = vmatpush.bf16.msra.mxu3 %v1584_v43 }
  0xe8   :  { %642 = vmatpush.bf16.msra.mxu2 %v1588_v47  ;;  %655 = vmatpush.bf16.msra.mxu3 %v1590_v51 }
  0xec   :  { %643 = vmatpush.bf16.msra.mxu2 %v1593_v54  ;;  %656 = vmatpush.bf16.msra.mxu3 %v1596_v55 }
  0xf0   :  { %644 = vmatpush.bf16.msra.mxu2 %v1599_v60  ;;  %657 = vmatpush.bf16.msra.mxu3 %v1602_v61 }
  0xf4   :  { %645 = vmatpush.bf16.msra.mxu2 %v1605_v18  ;;  %658 = vmatpush.bf16.msra.mxu3 %v1613_v20 }
 0x15a   :  { %v401_v57 = vpop.f32.mrf.mxu2  ;;  %v414_v58 = vpop.f32.mrf.mxu3 }
 0x15b   :  { %v402_v59 = vadd.f32 %v401_v57, %v1655_v53  ;;  %v415_v62 = vadd.f32 %v414_v58, %v1657_v56  ;;  %v306_v58 = vld [vmem:[#allocation10 + $0x8] sm:$0xff] }
 0x15d   :  { %v1110_v63 = vmul.f32 -1.442695, %v402_v59  ;;  %v1111_v16 = vmul.f32 -1.442695, %v415_v62 }
 0x15f   :  { %1207 = vpow2.f32 %v1110_v63 }
 0x160   :  { %1209 = vpow2.f32 %v1111_v16 }
 0x162   :  { %v403_v17 = vpop.f32.mrf.mxu2  ;;  %v416_v21 = vpop.f32.mrf.mxu3 }
 0x165   :  { %v1208_v22 = vpop.eup %1207 }
 0x166   :  { %v1210_v24 = vpop.eup %1209  ;;  %v424_v26 = vadd.f32 1.0, %v1208_v22 }
 0x167   :  { %v425_v27 = vadd.f32 1.0, %v1210_v24 }
 0x168   :  { %1211 = vrcp.f32 %v424_v26  ;;  %v437_v36 = vand.u32 2147483648, %v424_v26  ;;  %v435_v40 = vand.u32 2147483647, %v424_v26  ;;  %vm431_vm8 = vweird.f32 %v424_v26 }
 0x169   :  { %1213 = vrcp.f32 %v425_v27  ;;  %v452_v42 = vand.u32 2147483648, %v425_v27  ;;  %v450_v45 = vand.u32 2147483647, %v425_v27  ;;  %vm446_vm10 = vweird.f32 %v425_v27 }
 0x16a   :  { %v438_v49 = vor.u32 1.1754944e-38, %v437_v36  ;;  %vm436_vm11 = vcmp.eq.f32.partialorder %v435_v40, 8.507059e+37 }
 0x16b   :  { %v453_v59 = vor.u32 1.1754944e-38, %v452_v42  ;;  %vm451_vm13 = vcmp.eq.f32.partialorder %v450_v45, 8.507059e+37 }
 0x16e   :  { %v1212_v28 = vpop.eup %1211 }
 0x16f   :  { %v1214_v30 = vpop.eup %1213  ;;  %v427_v32 = vmul.f32 %v1212_v28, %v424_v26  ;;  %vm432_vm6 = vweird.f32 %v1212_v28 }
 0x170   :  { %v442_v33 = vmul.f32 %v1214_v30, %v425_v27  ;;  %vm447_vm7 = vweird.f32 %v1214_v30  ;;  %vm433_vm9 = vmor %vm431_vm8, %vm432_vm6 }
 0x171   :  { %v428_v34 = vsub.f32 1.0, %v427_v32  ;;  %vm448_vm12 = vmor %vm446_vm10, %vm447_vm7 }
 0x172   :  { %v443_v38 = vsub.f32 1.0, %v442_v33 }
 0x173   :  { %v429_v39 = vmul.f32 %v1212_v28, %v428_v34 }
 0x174   :  { %v444_v44 = vmul.f32 %v1214_v30, %v443_v38 }
 0x175   :  { %v430_v46 = vadd.f32 %v1212_v28, %v429_v39 }
 0x176   :  { %v445_v52 = vadd.f32 %v1214_v30, %v444_v44  ;;  %v463_v44 = vld [vmem:[#allocation8 + $0x8] sm:$0xff] }
 0x177   :  { %v434_v57 = vsel %vm433_vm9, %v1212_v28, %v430_v46 }
 0x178   :  { %v439_v62 = vsel %vm436_vm11, %v438_v49, %v434_v57  ;;  %v449_v63 = vsel %vm448_vm12, %v1214_v30, %v445_v52 }
 0x179   :  { %vm456_vm14 = vcmp.gt.f32.partialorder %v439_v62, %v305_v48  ;;  %v454_v16 = vsel %vm451_vm13, %v453_v59, %v449_v63 }
 0x17a   :  { %vm1112_vm15 = vmpackc.low %vm456_vm14, %vm456_vm14  ;;  %vm457_vm0 = vcmp.gt.f32.partialorder %v454_v16, %v306_v58 }
 0x17b   :  { %1113 = vmatmul.msk.bf16.vlgmr.msrb.gmra.mxu0 %vm1112_vm15, %v1426_v50  ;;  %vm1114_vm1 = vmpackc.low %vm457_vm0, %vm457_vm0 }
 0x17c   :  { %1115 = vmatmul.msk.bf16.vlgmr.msrb.gmra.mxu1 %vm1114_vm1, %v1426_v50  ;;  %710 = vmatpush.bf16.msrb.mxu0 %v1484_v0 }
 0x17d   :  { %723 = vmatpush.bf16.msrb.mxu1 %v1486_v1 }
 0x180   :  { %711 = vmatpush.bf16.msrb.mxu0 %v1490_v2 }
 0x181   :  { %724 = vmatpush.bf16.msrb.mxu1 %v1492_v3 }
 0x184   :  { %712 = vmatpush.bf16.msrb.mxu0 %v1496_v4 }
 0x185   :  { %725 = vmatpush.bf16.msrb.mxu1 %v1498_v5 }
 0x188   :  { %713 = vmatpush.bf16.msrb.mxu0 %v1502_v6 }
 0x189   :  { %726 = vmatpush.bf16.msrb.mxu1 %v1504_v7 }
 0x18c   :  { %714 = vmatpush.bf16.msrb.mxu0 %v1508_v8 }
 0x18d   :  { %727 = vmatpush.bf16.msrb.mxu1 %v1510_v9 }
 0x190   :  { %715 = vmatpush.bf16.msrb.mxu0 %v1514_v10 }
 0x191   :  { %728 = vmatpush.bf16.msrb.mxu1 %v1516_v11 }
 0x194   :  { %716 = vmatpush.bf16.msrb.mxu0 %v1520_v12 }
 0x195   :  { %729 = vmatpush.bf16.msrb.mxu1 %v1522_v13 }
 0x198   :  { %717 = vmatpush.bf16.msrb.mxu0 %v1524_v14 }
 0x199   :  { %730 = vmatpush.bf16.msrb.mxu1 %v1528_v15 }
 0x1f8   :  { %v473_v17 = vpop.f32.mrf.mxu0 }
 0x1f9   :  { %v474_v21 = vadd.f32 %v1610_v19, %v473_v17  ;;  %v486_v22 = vpop.f32.mrf.mxu1 }
 0x1fb   :  { %v487_v24 = vadd.f32 %v486_v22, %v474_v21 }
 0x1fd   :  { %v1116_v26 = vmul.f32 -1.442695, %v487_v24 }
 0x1ff   :  { %1215 = vpow2.f32 %v1116_v26 }
 0x200   :  { %v475_v27 = vpop.f32.mrf.mxu0 }
 0x201   :  { %v488_v28 = vpop.f32.mrf.mxu1 }
 0x205   :  { %v1216_v30 = vpop.eup %1215 }
 0x206   :  { %v493_v32 = vadd.f32 1.0, %v1216_v30 }
 0x208   :  { %1217 = vrcp.f32 %v493_v32  ;;  %v505_v38 = vand.u32 2147483648, %v493_v32  ;;  %v503_v40 = vand.u32 2147483647, %v493_v32  ;;  %vm499_vm3 = vweird.f32 %v493_v32 }
 0x20a   :  { %v506_v45 = vor.u32 1.1754944e-38, %v505_v38  ;;  %vm504_vm5 = vcmp.eq.f32.partialorder %v503_v40, 8.507059e+37 }
 0x20e   :  { %v1218_v33 = vpop.eup %1217 }
 0x20f   :  { %v495_v34 = vmul.f32 %v1218_v33, %v493_v32  ;;  %vm500_vm2 = vweird.f32 %v1218_v33 }
 0x210   :  { %vm501_vm4 = vmor %vm499_vm3, %vm500_vm2 }
 0x211   :  { %v496_v36 = vsub.f32 1.0, %v495_v34 }
 0x213   :  { %v497_v39 = vmul.f32 %v1218_v33, %v496_v36 }
 0x215   :  { %v498_v42 = vadd.f32 %v1218_v33, %v497_v39 }
 0x217   :  { %v502_v46 = vsel %vm501_vm4, %v1218_v33, %v498_v42 }
 0x218   :  { %v507_v48 = vsel %vm504_vm5, %v506_v45, %v502_v46  ;;  %v513_v45 = vld [vmem:[#allocation10 + $0x10] sm:$0xff] }
 0x219   :  { %vm509_vm6 = vcmp.gt.f32.partialorder %v507_v48, %v463_v44 }
 0x21a   :  { %vm1117_vm7 = vmpackc.low %vm509_vm6, %vm509_vm6 }
 0x21b   :  { %1118 = vmatmul.msk.bf16.vlgmr.msrb.gmra.mxu2 %vm1117_vm7, %v1426_v50  ;;  %1120 = vmatmul.msk.bf16.vlgmr.msrb.gmra.mxu3 %vm1117_vm7, %v1426_v50 }
 0x21c   :  { %761 = vmatpush.bf16.msrb.mxu2 %v1564_v23  ;;  %774 = vmatpush.bf16.msrb.mxu3 %v1566_v25 }
 0x220   :  { %762 = vmatpush.bf16.msrb.mxu2 %v1570_v29  ;;  %775 = vmatpush.bf16.msrb.mxu3 %v1572_v31 }
 0x224   :  { %763 = vmatpush.bf16.msrb.mxu2 %v1576_v35  ;;  %776 = vmatpush.bf16.msrb.mxu3 %v1578_v37 }
 0x228   :  { %764 = vmatpush.bf16.msrb.mxu2 %v1582_v41  ;;  %777 = vmatpush.bf16.msrb.mxu3 %v1584_v43 }
 0x22c   :  { %765 = vmatpush.bf16.msrb.mxu2 %v1588_v47  ;;  %778 = vmatpush.bf16.msrb.mxu3 %v1590_v51 }
 0x230   :  { %766 = vmatpush.bf16.msrb.mxu2 %v1593_v54  ;;  %779 = vmatpush.bf16.msrb.mxu3 %v1596_v55 }
 0x234   :  { %767 = vmatpush.bf16.msrb.mxu2 %v1599_v60  ;;  %780 = vmatpush.bf16.msrb.mxu3 %v1602_v61 }
 0x238   :  { %768 = vmatpush.bf16.msrb.mxu2 %v1605_v18  ;;  %781 = vmatpush.bf16.msrb.mxu3 %v1613_v20 }
 0x29e   :  { %v524_v49 = vpop.f32.mrf.mxu2  ;;  %v537_v52 = vpop.f32.mrf.mxu3 }
 0x29f   :  { %v525_v57 = vadd.f32 %v524_v49, %v1655_v53  ;;  %v538_v58 = vadd.f32 %v537_v52, %v1657_v56  ;;  %v514_v52 = vld [vmem:[#allocation10 + $0x18] sm:$0xff] }
 0x2a1   :  { %v1121_v59 = vmul.f32 -1.442695, %v525_v57  ;;  %v1122_v62 = vmul.f32 -1.442695, %v538_v58 }
 0x2a3   :  { %1219 = vpow2.f32 %v1121_v59 }
 0x2a4   :  { %1221 = vpow2.f32 %v1122_v62 }
 0x2a6   :  { %v526_v63 = vpop.f32.mrf.mxu2  ;;  %v539_v16 = vpop.f32.mrf.mxu3 }
 0x2a7   :  { %v586_v63 = vld [vmem:[#allocation8 + $0x10] sm:$0xff] }
 0x2a9   :  { %v1220_v17 = vpop.eup %1219 }
 0x2aa   :  { %v1222_v21 = vpop.eup %1221  ;;  %v547_v22 = vadd.f32 1.0, %v1220_v17 }
 0x2ab   :  { %v548_v24 = vadd.f32 1.0, %v1222_v21 }
 0x2ac   :  { %1223 = vrcp.f32 %v547_v22  ;;  %v560_v34 = vand.u32 2147483648, %v547_v22  ;;  %v558_v38 = vand.u32 2147483647, %v547_v22  ;;  %vm554_vm10 = vweird.f32 %v547_v22 }
 0x2ad   :  { %1225 = vrcp.f32 %v548_v24  ;;  %v575_v39 = vand.u32 2147483648, %v548_v24  ;;  %v573_v42 = vand.u32 2147483647, %v548_v24  ;;  %vm569_vm12 = vweird.f32 %v548_v24 }
 0x2ae   :  { %v561_v46 = vor.u32 1.1754944e-38, %v560_v34  ;;  %vm559_vm13 = vcmp.eq.f32.partialorder %v558_v38, 8.507059e+37 }
 0x2af   :  { %v576_v57 = vor.u32 1.1754944e-38, %v575_v39  ;;  %vm574_vm15 = vcmp.eq.f32.partialorder %v573_v42, 8.507059e+37  ;;  %v637_v42 = vld [vmem:[#allocation10 + $0x28] sm:$0xff] }
 0x2b2   :  { %v1224_v26 = vpop.eup %1223 }
 0x2b3   :  { %v1226_v27 = vpop.eup %1225  ;;  %v550_v28 = vmul.f32 %v1224_v26, %v547_v22  ;;  %vm555_vm8 = vweird.f32 %v1224_v26 }
 0x2b4   :  { %v565_v30 = vmul.f32 %v1226_v27, %v548_v24  ;;  %vm570_vm9 = vweird.f32 %v1226_v27  ;;  %vm556_vm11 = vmor %vm554_vm10, %vm555_vm8 }
 0x2b5   :  { %v551_v32 = vsub.f32 1.0, %v550_v28  ;;  %vm571_vm14 = vmor %vm569_vm12, %vm570_vm9 }
 0x2b6   :  { %v566_v33 = vsub.f32 1.0, %v565_v30 }
 0x2b7   :  { %v552_v36 = vmul.f32 %v1224_v26, %v551_v32 }
 0x2b8   :  { %v567_v40 = vmul.f32 %v1226_v27, %v566_v33 }
 0x2b9   :  { %v553_v44 = vadd.f32 %v1224_v26, %v552_v36  ;;  %v636_v36 = vld [vmem:[#allocation10 + $0x20] sm:$0xff] }
 0x2ba   :  { %v568_v48 = vadd.f32 %v1226_v27, %v567_v40 }
 0x2bb   :  { %v557_v49 = vsel %vm556_vm11, %v1224_v26, %v553_v44 }
 0x2bc   :  { %v562_v58 = vsel %vm559_vm13, %v561_v46, %v557_v49  ;;  %v572_v59 = vsel %vm571_vm14, %v1226_v27, %v568_v48 }
 0x2bd   :  { %vm579_vm0 = vcmp.gt.f32.partialorder %v562_v58, %v513_v45  ;;  %v577_v62 = vsel %vm574_vm15, %v576_v57, %v572_v59 }
 0x2be   :  { %vm1123_vm1 = vmpackc.low %vm579_vm0, %vm579_vm0  ;;  %vm580_vm2 = vcmp.gt.f32.partialorder %v577_v62, %v514_v52 }
 0x2bf   :  { %1124 = vmatmul.msk.bf16.vlgmr.msra.gmra.mxu0 %vm1123_vm1, %v1426_v50  ;;  %vm1125_vm3 = vmpackc.low %vm580_vm2, %vm580_vm2 }
 0x2c0   :  { %1126 = vmatmul.msk.bf16.vlgmr.msra.gmra.mxu1 %vm1125_vm3, %v1426_v50  ;;  %833 = vmatpush.bf16.msra.mxu0 %v1484_v0 }
 0x2c1   :  { %846 = vmatpush.bf16.msra.mxu1 %v1486_v1 }
 0x2c4   :  { %834 = vmatpush.bf16.msra.mxu0 %v1490_v2 }
 0x2c5   :  { %847 = vmatpush.bf16.msra.mxu1 %v1492_v3 }
 0x2c8   :  { %835 = vmatpush.bf16.msra.mxu0 %v1496_v4 }
 0x2c9   :  { %848 = vmatpush.bf16.msra.mxu1 %v1498_v5 }
 0x2cc   :  { %836 = vmatpush.bf16.msra.mxu0 %v1502_v6 }
 0x2cd   :  { %849 = vmatpush.bf16.msra.mxu1 %v1504_v7 }
 0x2d0   :  { %837 = vmatpush.bf16.msra.mxu0 %v1508_v8 }
 0x2d1   :  { %850 = vmatpush.bf16.msra.mxu1 %v1510_v9 }
 0x2d4   :  { %838 = vmatpush.bf16.msra.mxu0 %v1514_v10 }
 0x2d5   :  { %851 = vmatpush.bf16.msra.mxu1 %v1516_v11 }
 0x2d8   :  { %839 = vmatpush.bf16.msra.mxu0 %v1520_v12 }
 0x2d9   :  { %852 = vmatpush.bf16.msra.mxu1 %v1522_v13 }
 0x2dc   :  { %840 = vmatpush.bf16.msra.mxu0 %v1524_v14 }
 0x2dd   :  { %853 = vmatpush.bf16.msra.mxu1 %v1528_v15 }
 0x33c   :  { %v596_v0 = vpop.f32.mrf.mxu0 }
 0x33d   :  { %v597_v1 = vadd.f32 %v1610_v19, %v596_v0  ;;  %v609_v2 = vpop.f32.mrf.mxu1 }
 0x33f   :  { %v610_v3 = vadd.f32 %v609_v2, %v597_v1 }
 0x341   :  { %v1127_v4 = vmul.f32 -1.442695, %v610_v3 }
 0x343   :  { %1227 = vpow2.f32 %v1127_v4 }
 0x344   :  { %v598_v5 = vpop.f32.mrf.mxu0 }
 0x345   :  { %v611_v6 = vpop.f32.mrf.mxu1 }
 0x349   :  { %v1228_v7 = vpop.eup %1227 }
 0x34a   :  { %v616_v8 = vadd.f32 1.0, %v1228_v7 }
 0x34c   :  { %1229 = vrcp.f32 %v616_v8  ;;  %v628_v12 = vand.u32 2147483648, %v616_v8  ;;  %v626_v14 = vand.u32 2147483647, %v616_v8  ;;  %vm622_vm5 = vweird.f32 %v616_v8 }
 0x34e   :  { %v629_v16 = vor.u32 1.1754944e-38, %v628_v12  ;;  %vm627_vm7 = vcmp.eq.f32.partialorder %v626_v14, 8.507059e+37 }
 0x352   :  { %v1230_v9 = vpop.eup %1229 }
 0x353   :  { %v618_v10 = vmul.f32 %v1230_v9, %v616_v8  ;;  %vm623_vm4 = vweird.f32 %v1230_v9 }
 0x354   :  { %vm624_vm6 = vmor %vm622_vm5, %vm623_vm4 }
 0x355   :  { %v619_v11 = vsub.f32 1.0, %v618_v10  ;;  %v709_v10 = vld [vmem:[#allocation8 + $0x18] sm:$0xff] }
 0x357   :  { %v620_v13 = vmul.f32 %v1230_v9, %v619_v11 }
 0x359   :  { %v621_v15 = vadd.f32 %v1230_v9, %v620_v13 }
 0x35b   :  { %v625_v17 = vsel %vm624_vm6, %v1230_v9, %v621_v15 }
 0x35c   :  { %v630_v21 = vsel %vm627_vm7, %v629_v16, %v625_v17 }
 0x35d   :  { %vm632_vm8 = vcmp.gt.f32.partialorder %v630_v21, %v586_v63 }
 0x35e   :  { %vm1128_vm9 = vmpackc.low %vm632_vm8, %vm632_vm8 }
 0x35f   :  { %1129 = vmatmul.msk.bf16.vlgmr.msra.gmra.mxu2 %vm1128_vm9, %v1426_v50  ;;  %1131 = vmatmul.msk.bf16.vlgmr.msra.gmra.mxu3 %vm1128_vm9, %v1426_v50 }
 0x360   :  { %884 = vmatpush.bf16.msra.mxu2 %v1564_v23  ;;  %897 = vmatpush.bf16.msra.mxu3 %v1566_v25 }
 0x364   :  { %885 = vmatpush.bf16.msra.mxu2 %v1570_v29  ;;  %898 = vmatpush.bf16.msra.mxu3 %v1572_v31 }
 0x368   :  { %886 = vmatpush.bf16.msra.mxu2 %v1576_v35  ;;  %899 = vmatpush.bf16.msra.mxu3 %v1578_v37 }
 0x36c   :  { %887 = vmatpush.bf16.msra.mxu2 %v1582_v41  ;;  %900 = vmatpush.bf16.msra.mxu3 %v1584_v43 }
 0x370   :  { %888 = vmatpush.bf16.msra.mxu2 %v1588_v47  ;;  %901 = vmatpush.bf16.msra.mxu3 %v1590_v51 }
 0x374   :  { %889 = vmatpush.bf16.msra.mxu2 %v1593_v54  ;;  %902 = vmatpush.bf16.msra.mxu3 %v1596_v55 }
 0x378   :  { %890 = vmatpush.bf16.msra.mxu2 %v1599_v60  ;;  %903 = vmatpush.bf16.msra.mxu3 %v1602_v61 }
 0x37c   :  { %891 = vmatpush.bf16.msra.mxu2 %v1605_v18  ;;  %904 = vmatpush.bf16.msra.mxu3 %v1613_v20 }
 0x3e2   :  { %v647_v23 = vpop.f32.mrf.mxu2  ;;  %v660_v25 = vpop.f32.mrf.mxu3 }
 0x3e3   :  { %v648_v29 = vadd.f32 %v647_v23, %v1655_v53  ;;  %v661_v31 = vadd.f32 %v660_v25, %v1657_v56 }
 0x3e5   :  { %v1132_v35 = vmul.f32 -1.442695, %v648_v29  ;;  %v1133_v37 = vmul.f32 -1.442695, %v661_v31 }
 0x3e7   :  { %1231 = vpow2.f32 %v1132_v35 }
 0x3e8   :  { %1233 = vpow2.f32 %v1133_v37 }
 0x3ea   :  { %v649_v41 = vpop.f32.mrf.mxu2  ;;  %v662_v43 = vpop.f32.mrf.mxu3 }
 0x3ed   :  { %v1232_v47 = vpop.eup %1231 }
 0x3ee   :  { %v1234_v51 = vpop.eup %1233  ;;  %v670_v54 = vadd.f32 1.0, %v1232_v47 }
 0x3ef   :  { %v671_v55 = vadd.f32 1.0, %v1234_v51 }
 0x3f0   :  { %1235 = vrcp.f32 %v670_v54  ;;  %v683_v26 = vand.u32 2147483648, %v670_v54  ;;  %v681_v28 = vand.u32 2147483647, %v670_v54  ;;  %vm677_vm12 = vweird.f32 %v670_v54 }
 0x3f1   :  { %1237 = vrcp.f32 %v671_v55  ;;  %v698_v30 = vand.u32 2147483648, %v671_v55  ;;  %v696_v33 = vand.u32 2147483647, %v671_v55  ;;  %vm692_vm14 = vweird.f32 %v671_v55 }
 0x3f2   :  { %v684_v38 = vor.u32 1.1754944e-38, %v683_v26  ;;  %vm682_vm15 = vcmp.eq.f32.partialorder %v681_v28, 8.507059e+37 }
 0x3f3   :  { %v699_v44 = vor.u32 1.1754944e-38, %v698_v30  ;;  %vm697_vm1 = vcmp.eq.f32.partialorder %v696_v33, 8.507059e+37  ;;  %v760_v33 = vld [vmem:[#allocation10 + $0x38] sm:$0xff] }
 0x3f6   :  { %v1236_v60 = vpop.eup %1235 }
 0x3f7   :  { %v1238_v61 = vpop.eup %1237  ;;  %v673_v18 = vmul.f32 %v1236_v60, %v670_v54  ;;  %vm678_vm10 = vweird.f32 %v1236_v60 }
 0x3f8   :  { %v688_v20 = vmul.f32 %v1238_v61, %v671_v55  ;;  %vm693_vm11 = vweird.f32 %v1238_v61  ;;  %vm679_vm13 = vmor %vm677_vm12, %vm678_vm10 }
 0x3f9   :  { %v674_v22 = vsub.f32 1.0, %v673_v18  ;;  %vm694_vm0 = vmor %vm692_vm14, %vm693_vm11 }
 0x3fa   :  { %v689_v24 = vsub.f32 1.0, %v688_v20 }
 0x3fb   :  { %v675_v27 = vmul.f32 %v1236_v60, %v674_v22 }
 0x3fc   :  { %v690_v32 = vmul.f32 %v1238_v61, %v689_v24 }
 0x3fd   :  { %v676_v34 = vadd.f32 %v1236_v60, %v675_v27  ;;  %v759_v27 = vld [vmem:[#allocation10 + $0x30] sm:$0xff] }
 0x3fe   :  { %v691_v39 = vadd.f32 %v1238_v61, %v690_v32 }
 0x3ff   :  { %v680_v40 = vsel %vm679_vm13, %v1236_v60, %v676_v34 }
 0x400   :  { %v685_v45 = vsel %vm682_vm15, %v684_v38, %v680_v40  ;;  %v695_v46 = vsel %vm694_vm0, %v1238_v61, %v691_v39 }
 0x401   :  { %vm702_vm2 = vcmp.gt.f32.partialorder %v685_v45, %v636_v36  ;;  %v700_v48 = vsel %vm697_vm1, %v699_v44, %v695_v46 }
 0x402   :  { %vm1134_vm3 = vmpackc.low %vm702_vm2, %vm702_vm2  ;;  %vm703_vm4 = vcmp.gt.f32.partialorder %v700_v48, %v637_v42 }
 0x403   :  { %1135 = vmatmul.msk.bf16.vlgmr.msrb.gmra.mxu0 %vm1134_vm3, %v1426_v50  ;;  %vm1136_vm5 = vmpackc.low %vm703_vm4, %vm703_vm4 }
 0x404   :  { %1137 = vmatmul.msk.bf16.vlgmr.msrb.gmra.mxu1 %vm1136_vm5, %v1426_v50 }
 0x480   :  { %v719_v49 = vpop.f32.mrf.mxu0 }
 0x481   :  { %v720_v52 = vadd.f32 %v1610_v19, %v719_v49  ;;  %v732_v57 = vpop.f32.mrf.mxu1 }
 0x483   :  { %v733_v58 = vadd.f32 %v732_v57, %v720_v52 }
 0x485   :  { %v1138_v59 = vmul.f32 -1.442695, %v733_v58 }
 0x487   :  { %1239 = vpow2.f32 %v1138_v59 }
 0x488   :  { %v721_v62 = vpop.f32.mrf.mxu0 }
 0x489   :  { %v734_v0 = vpop.f32.mrf.mxu1 }
 0x48d   :  { %v1240_v1 = vpop.eup %1239 }
 0x48e   :  { %v739_v2 = vadd.f32 1.0, %v1240_v1 }
 0x490   :  { %1241 = vrcp.f32 %v739_v2  ;;  %v751_v6 = vand.u32 2147483648, %v739_v2  ;;  %v749_v8 = vand.u32 2147483647, %v739_v2  ;;  %vm745_vm7 = vweird.f32 %v739_v2 }
 0x492   :  { %v752_v11 = vor.u32 1.1754944e-38, %v751_v6  ;;  %vm750_vm9 = vcmp.eq.f32.partialorder %v749_v8, 8.507059e+37 }
 0x496   :  { %v1242_v3 = vpop.eup %1241 }
 0x497   :  { %v741_v4 = vmul.f32 %v1242_v3, %v739_v2  ;;  %vm746_vm6 = vweird.f32 %v1242_v3 }
 0x498   :  { %vm747_vm8 = vmor %vm745_vm7, %vm746_vm6 }
 0x499   :  { %v742_v5 = vsub.f32 1.0, %v741_v4  ;;  %v832_v4 = vld [vmem:[#allocation8 + $0x20] sm:$0xff] }
 0x49b   :  { %v743_v7 = vmul.f32 %v1242_v3, %v742_v5 }
 0x49d   :  { %v744_v9 = vadd.f32 %v1242_v3, %v743_v7 }
 0x49f   :  { %v748_v12 = vsel %vm747_vm8, %v1242_v3, %v744_v9 }
 0x4a0   :  { %v753_v13 = vsel %vm750_vm9, %v752_v11, %v748_v12 }
 0x4a1   :  { %vm755_vm10 = vcmp.gt.f32.partialorder %v753_v13, %v709_v10 }
 0x4a2   :  { %vm1139_vm11 = vmpackc.low %vm755_vm10, %vm755_vm10 }
 0x4a3   :  { %1140 = vmatmul.msk.bf16.vlgmr.msrb.gmra.mxu2 %vm1139_vm11, %v1426_v50  ;;  %1142 = vmatmul.msk.bf16.vlgmr.msrb.gmra.mxu3 %vm1139_vm11, %v1426_v50 }
 0x526   :  { %v770_v14 = vpop.f32.mrf.mxu2  ;;  %v783_v15 = vpop.f32.mrf.mxu3 }
 0x527   :  { %v771_v63 = vadd.f32 %v770_v14, %v1655_v53  ;;  %v784_v16 = vadd.f32 %v783_v15, %v1657_v56 }
 0x529   :  { %v1143_v17 = vmul.f32 -1.442695, %v771_v63  ;;  %v1144_v21 = vmul.f32 -1.442695, %v784_v16 }
 0x52b   :  { %1243 = vpow2.f32 %v1143_v17 }
 0x52c   :  { %1245 = vpow2.f32 %v1144_v21 }
 0x52e   :  { %v772_v23 = vpop.f32.mrf.mxu2  ;;  %v785_v25 = vpop.f32.mrf.mxu3 }
 0x531   :  { %v1244_v29 = vpop.eup %1243 }
 0x532   :  { %v1246_v31 = vpop.eup %1245  ;;  %v793_v35 = vadd.f32 1.0, %v1244_v29 }
 0x533   :  { %v794_v37 = vadd.f32 1.0, %v1246_v31 }
 0x534   :  { %1247 = vrcp.f32 %v793_v35  ;;  %v806_v60 = vand.u32 2147483648, %v793_v35  ;;  %v804_v18 = vand.u32 2147483647, %v793_v35  ;;  %vm800_vm14 = vweird.f32 %v793_v35 }
 0x535   :  { %1249 = vrcp.f32 %v794_v37  ;;  %v821_v20 = vand.u32 2147483648, %v794_v37  ;;  %v819_v24 = vand.u32 2147483647, %v794_v37  ;;  %vm815_vm0 = vweird.f32 %v794_v37 }
 0x536   :  { %v807_v28 = vor.u32 1.1754944e-38, %v806_v60  ;;  %vm805_vm1 = vcmp.eq.f32.partialorder %v804_v18, 8.507059e+37  ;;  %v883_v60 = vld [vmem:[#allocation10 + $0x48] sm:$0xff] }
 0x537   :  { %v822_v34 = vor.u32 1.1754944e-38, %v821_v20  ;;  %vm820_vm3 = vcmp.eq.f32.partialorder %v819_v24, 8.507059e+37 }
 0x53a   :  { %v1248_v41 = vpop.eup %1247 }
 0x53b   :  { %v1250_v43 = vpop.eup %1249  ;;  %v796_v47 = vmul.f32 %v1248_v41, %v793_v35  ;;  %vm801_vm12 = vweird.f32 %v1248_v41 }
 0x53c   :  { %v811_v51 = vmul.f32 %v1250_v43, %v794_v37  ;;  %vm816_vm13 = vweird.f32 %v1250_v43  ;;  %vm802_vm15 = vmor %vm800_vm14, %vm801_vm12 }
 0x53d   :  { %v797_v54 = vsub.f32 1.0, %v796_v47  ;;  %vm817_vm2 = vmor %vm815_vm0, %vm816_vm13 }
 0x53e   :  { %v812_v55 = vsub.f32 1.0, %v811_v51  ;;  %v882_v51 = vld [vmem:[#allocation10 + $0x40] sm:$0xff] }
 0x53f   :  { %v798_v61 = vmul.f32 %v1248_v41, %v797_v54 }
 0x540   :  { %v813_v22 = vmul.f32 %v1250_v43, %v812_v55 }
 0x541   :  { %v799_v26 = vadd.f32 %v1248_v41, %v798_v61 }
 0x542   :  { %v814_v30 = vadd.f32 %v1250_v43, %v813_v22 }
 0x543   :  { %v803_v32 = vsel %vm802_vm15, %v1248_v41, %v799_v26  ;;  %v1428_v26 = vmov 0.0  }
 0x544   :  { %v808_v36 = vsel %vm805_vm1, %v807_v28, %v803_v32  ;;  %v818_v38 = vsel %vm817_vm2, %v1250_v43, %v814_v30 }
 0x545   :  { %vm825_vm4 = vcmp.gt.f32.partialorder %v808_v36, %v759_v27  ;;  %v823_v39 = vsel %vm820_vm3, %v822_v34, %v818_v38 }
 0x546   :  { %vm1145_vm5 = vmpackc.low %vm825_vm4, %vm825_vm4  ;;  %vm826_vm6 = vcmp.gt.f32.partialorder %v823_v39, %v760_v33 }
 0x547   :  { %1146 = vmatmul.msk.bf16.vlgmr.msra.gmra.mxu0 %vm1145_vm5, %v1426_v50  ;;  %vm1147_vm7 = vmpackc.low %vm826_vm6, %vm826_vm6 }
 0x548   :  { %1148 = vmatmul.msk.bf16.vlgmr.msra.gmra.mxu1 %vm1147_vm7, %v1426_v50 }
 0x5c4   :  { %v842_v40 = vpop.f32.mrf.mxu0 }
 0x5c5   :  { %v843_v42 = vadd.f32 %v1610_v19, %v842_v40  ;;  %v855_v44 = vpop.f32.mrf.mxu1 }
 0x5c7   :  { %v856_v45 = vadd.f32 %v855_v44, %v843_v42 }
 0x5c9   :  { %v1149_v46 = vmul.f32 -1.442695, %v856_v45 }
 0x5cb   :  { %1251 = vpow2.f32 %v1149_v46 }
 0x5cc   :  { %v844_v48 = vpop.f32.mrf.mxu0 }
 0x5cd   :  { %v857_v49 = vpop.f32.mrf.mxu1 }
 0x5d1   :  { %v1252_v52 = vpop.eup %1251 }
 0x5d2   :  { %v862_v57 = vadd.f32 1.0, %v1252_v52 }
 0x5d4   :  { %1253 = vrcp.f32 %v862_v57  ;;  %v874_v0 = vand.u32 2147483648, %v862_v57  ;;  %v872_v2 = vand.u32 2147483647, %v862_v57  ;;  %vm868_vm9 = vweird.f32 %v862_v57 }
 0x5d6   :  { %v875_v19 = vor.u32 1.1754944e-38, %v874_v0  ;;  %vm873_vm11 = vcmp.eq.f32.partialorder %v872_v2, 8.507059e+37 }
 0x5da   :  { %v1254_v58 = vpop.eup %1253 }
 0x5db   :  { %v864_v59 = vmul.f32 %v1254_v58, %v862_v57  ;;  %vm869_vm8 = vweird.f32 %v1254_v58 }
 0x5dc   :  { %vm870_vm10 = vmor %vm868_vm9, %vm869_vm8 }
 0x5dd   :  { %v865_v62 = vsub.f32 1.0, %v864_v59 }
 0x5df   :  { %v866_v1 = vmul.f32 %v1254_v58, %v865_v62 }
 0x5e1   :  { %v867_v3 = vadd.f32 %v1254_v58, %v866_v1 }
 0x5e3   :  { %v871_v5 = vsel %vm870_vm10, %v1254_v58, %v867_v3 }
 0x5e4   :  { %v876_v6 = vsel %vm873_vm11, %v875_v19, %v871_v5 }
 0x5e5   :  { %vm878_vm12 = vcmp.gt.f32.partialorder %v876_v6, %v832_v4 }
 0x5e6   :  { %vm1150_vm13 = vmpackc.low %vm878_vm12, %vm878_vm12 }
 0x5e7   :  { %1151 = vmatmul.msk.bf16.vlgmr.msra.gmra.mxu2 %vm1150_vm13, %v1426_v50  ;;  %1153 = vmatmul.msk.bf16.vlgmr.msra.gmra.mxu3 %vm1150_vm13, %v1426_v50 }
 0x66a   :  { %v893_v7 = vpop.f32.mrf.mxu2  ;;  %v906_v8 = vpop.f32.mrf.mxu3 }
 0x66b   :  { %v894_v9 = vadd.f32 %v893_v7, %v1655_v53  ;;  %v907_v10 = vadd.f32 %v906_v8, %v1657_v56 }
 0x66d   :  { %v1154_v11 = vmul.f32 -1.442695, %v894_v9  ;;  %v1155_v12 = vmul.f32 -1.442695, %v907_v10 }
 0x66f   :  { %1255 = vpow2.f32 %v1154_v11 }
 0x670   :  { %1257 = vpow2.f32 %v1155_v12 }
 0x672   :  { %v895_v13 = vpop.f32.mrf.mxu2  ;;  %v908_v14 = vpop.f32.mrf.mxu3 }
 0x675   :  { %v1256_v15 = vpop.eup %1255 }
 0x676   :  { %v1258_v63 = vpop.eup %1257  ;;  %v916_v16 = vadd.f32 1.0, %v1256_v15 }
 0x677   :  { %v917_v17 = vadd.f32 1.0, %v1258_v63 }
 0x678   :  { %1259 = vrcp.f32 %v916_v16  ;;  %v929_v31 = vand.u32 2147483648, %v916_v16  ;;  %v927_v35 = vand.u32 2147483647, %v916_v16  ;;  %vm923_vm0 = vweird.f32 %v916_v16 }
 0x679   :  { %1261 = vrcp.f32 %v917_v17  ;;  %v944_v37 = vand.u32 2147483648, %v917_v17  ;;  %v942_v43 = vand.u32 2147483647, %v917_v17  ;;  %vm938_vm2 = vweird.f32 %v917_v17 }
 0x67a   :  { %v930_v54 = vor.u32 1.1754944e-38, %v929_v31  ;;  %vm928_vm3 = vcmp.eq.f32.partialorder %v927_v35, 8.507059e+37 }
 0x67b   :  { %v945_v18 = vor.u32 1.1754944e-38, %v944_v37  ;;  %vm943_vm5 = vcmp.eq.f32.partialorder %v942_v43, 8.507059e+37 }
 0x67e   :  { %v1260_v21 = vpop.eup %1259 }
 0x67f   :  { %v1262_v50 = vpop.eup %1261  ;;  %v919_v23 = vmul.f32 %v1260_v21, %v916_v16  ;;  %vm924_vm14 = vweird.f32 %v1260_v21 }
 0x680   :  { %v934_v25 = vmul.f32 %v1262_v50, %v917_v17  ;;  %vm939_vm15 = vweird.f32 %v1262_v50  ;;  %vm925_vm1 = vmor %vm923_vm0, %vm924_vm14 }
 0x681   :  { %v920_v29 = vsub.f32 1.0, %v919_v23  ;;  %vm940_vm4 = vmor %vm938_vm2, %vm939_vm15 }
 0x682   :  { %v935_v53 = vsub.f32 1.0, %v934_v25 }
 0x683   :  { %v921_v56 = vmul.f32 %v1260_v21, %v920_v29 }
 0x684   :  { %v936_v41 = vmul.f32 %v1262_v50, %v935_v53 }
 0x685   :  { %v922_v47 = vadd.f32 %v1260_v21, %v921_v56 }
 0x686   :  { %v937_v55 = vadd.f32 %v1262_v50, %v936_v41 }
 0x687   :  { %v926_v61 = vsel %vm925_vm1, %v1260_v21, %v922_v47 }
 0x688   :  { %v931_v20 = vsel %vm928_vm3, %v930_v54, %v926_v61  ;;  %v941_v22 = vsel %vm940_vm4, %v1262_v50, %v937_v55 }
 0x689   :  { %v946_v24 = vsel %vm943_vm5, %v945_v18, %v941_v22  ;;  %vm948_vm6 = vcmp.gt.f32.partialorder %v931_v20, %v882_v51 }
 0x68a   :  { %vm949_vm7 = vcmp.gt.f32.partialorder %v946_v24, %v883_v60  ;;  %v950_v27 = vsel %vm948_vm6, 1.0, %v1428_v26 }
 0x68b   :  { %v951_v28 = vsel %vm949_vm7, 1.0, %v1428_v26  ;;  %956 = vst [vmem:[#allocation11] sm:$0xff] %v950_v27 }
 0x68c   :  { %957 = vst [vmem:[#allocation11 + $0x8] sm:$0xff] %v951_v28 }
 0x68d   :  { %968 = dma.vmem_to_hbm [thread:$0]  %s964_s30, 256, %s966_s10, [#allocation4]  }
 0x68e   :  { %1413 = dma.done.wait [#allocation4], 256  }
 0x68f   :  { %1414 = vsyncadd [#allocation4], 4294967040 }
 0x690   :  { %973 = vsyncpa [#allocation3], 1 }
 0x691   :  { %974 = vsyncpa [#allocation6], 1 }
 0x692   :  { %975 = vsyncpa [#allocation9], 1 }
 0x693   :  { %976 = vsyncpa [#allocation4], 1 }

</bundles_post_ra>
